<compile_context>
chip_gen: v6e
topology: v6e:2x2x1
jax: 0.10.0
libtpu: 0.0.40
codegen_flags: <defaults>
</compile_context>

<pallas_src>
import jax
import jax.numpy as jnp
from jax.experimental import pallas as pl
from jax.experimental.pallas import tpu as pltpu


def _vmem_capacity_bytes():
    """Physical VMEM of the local chip; conservative default if unqueryable."""
    try:
        info = pltpu.get_tpu_info()
        cap = getattr(info, "vmem_capacity_bytes", None)
        if cap:
            return int(cap)
    except Exception:
        pass
    return 64 * 1024 * 1024  # v7x per-TC size: safe lower bound everywhere


def _divisor_tile(n, unit, max_tile):
    """Largest divisor of n that is a multiple of `unit` and <= max_tile.

    Returns n itself (full extent, always a legal block) when n already fits
    under max_tile or when no such divisor exists.
    """
    if n <= max_tile:
        return n
    t = (max_tile // unit) * unit
    while t >= unit:
        if n % t == 0:
            return t
        t -= unit
    return n


def _pick_tiles(c, hw, itemsize, *, sp_cap=2048, target_block_bytes=2 * 1024 * 1024):
    """Lane-dense spatial tile + dtype-aware channel tile (~target bytes/block)."""
    sub_unit = {4: 8, 2: 16, 1: 32}.get(itemsize, 8)
    sp_t = _divisor_tile(hw, 128, sp_cap)
    max_ct = max(sub_unit, target_block_bytes // max(1, sp_t * itemsize))
    c_t = _divisor_tile(c, sub_unit, max_ct)
    return c_t, sp_t


# --------------------------------------------------------------------------
# Fused path: one kernel, one pass over x.
# --------------------------------------------------------------------------
def _se_fused(xf, w1, w2, inv_hw, vmem_limit):
    b, c, hw = xf.shape
    hid = w1.shape[0]

    def kernel(x_ref, w1_ref, w2_ref, o_ref):
        xb = x_ref[0]                                               # (C, HW)
        # Global average pool over the lane axis, accumulated in f32.
        pooled = jnp.sum(xb, axis=-1, keepdims=True,
                         dtype=jnp.float32) * inv_hw                # (C, 1)
        # FC1 -> ReLU -> FC2 -> sigmoid (tiny GEMVs, hidden under the DMA).
        hvec = jax.lax.dot_general(
            w1_ref[...], pooled, (((1,), (0,)), ((), ())),
            preferred_element_type=jnp.float32)                     # (hid, 1)
        hvec = jnp.maximum(hvec, 0.0)
        s = jax.lax.dot_general(
            w2_ref[...], hvec, (((1,), (0,)), ((), ())),
            preferred_element_type=jnp.float32)                     # (C, 1)
        gate = jax.nn.sigmoid(s).astype(o_ref.dtype)                # (C, 1)
        # Lane-broadcast multiply in the native dtype, lane-dense store.
        o_ref[...] = (xb * gate)[None]

    return pl.pallas_call(
        kernel,
        out_shape=jax.ShapeDtypeStruct((b, c, hw), xf.dtype),
        grid_spec=pltpu.PrefetchScalarGridSpec(
            num_scalar_prefetch=0,
            grid=(b,),
            in_specs=[
                pl.BlockSpec((1, c, hw), lambda bi: (bi, 0, 0)),
                pl.BlockSpec((hid, c), lambda bi: (0, 0)),
                pl.BlockSpec((c, hid), lambda bi: (0, 0)),
            ],
            out_specs=pl.BlockSpec((1, c, hw), lambda bi: (bi, 0, 0)),
        ),
        compiler_params=pltpu.CompilerParams(
            dimension_semantics=("parallel",),
            vmem_limit_bytes=vmem_limit,
        ),
    )(xf, w1, w2)


# --------------------------------------------------------------------------
# Fallback path: pooling kernel + tiny batched FCs (plain JAX) + scale kernel.
# --------------------------------------------------------------------------
def _se_two_pass(xf, w1, w2, inv_hw, vmem_limit, itemsize):
    b, c, hw = xf.shape

    c_t, sp_t = _pick_tiles(c, hw, itemsize)
    n_c = c // c_t
    n_sp = hw // sp_t

    # ---- pass 1: per-channel pooled sums (B, C, 1) in f32 -------------------
    def pool_kernel(x_ref, s_ref):
        si = pl.program_id(2)
        part = jnp.sum(x_ref[...], axis=-1, keepdims=True, dtype=jnp.float32)

        @pl.when(si == 0)
        def _():
            s_ref[...] = part

        @pl.when(si > 0)
        def _():
            s_ref[...] += part

    pooled = pl.pallas_call(
        pool_kernel,
        out_shape=jax.ShapeDtypeStruct((b, c, 1), jnp.float32),
        grid_spec=pltpu.PrefetchScalarGridSpec(
            num_scalar_prefetch=0,
            grid=(b, n_c, n_sp),
            in_specs=[
                pl.BlockSpec((1, c_t, sp_t), lambda bi, ci, si: (bi, ci, si)),
            ],
            # Output block constant across the (last) spatial axis -> resident
            # accumulator; reset at si == 0.
            out_specs=pl.BlockSpec((1, c_t, 1), lambda bi, ci, si: (bi, ci, 0)),
        ),
        compiler_params=pltpu.CompilerParams(
            dimension_semantics=("parallel", "parallel", "arbitrary"),
            vmem_limit_bytes=vmem_limit,
        ),
    )(xf)

    # ---- tiny batched FC -> ReLU -> FC -> sigmoid in plain JAX --------------
    y = pooled[:, :, 0] * inv_hw                                    # (B, C) f32
    hvec = jnp.maximum(y @ w1.astype(jnp.float32).T, 0.0)           # (B, hid)
    gates = jax.nn.sigmoid(hvec @ w2.astype(jnp.float32).T)         # (B, C)
    gates = gates[:, :, None]                                       # (B, C, 1)

    # ---- pass 2: stream x and scale by the per-channel gate -----------------
    def scale_kernel(x_ref, g_ref, o_ref):
        o_ref[...] = x_ref[...] * g_ref[...].astype(o_ref.dtype)

    out = pl.pallas_call(
        scale_kernel,
        out_shape=jax.ShapeDtypeStruct((b, c, hw), xf.dtype),
        grid_spec=pltpu.PrefetchScalarGridSpec(
            num_scalar_prefetch=0,
            grid=(b, n_c, n_sp),
            in_specs=[
                pl.BlockSpec((1, c_t, sp_t), lambda bi, ci, si: (bi, ci, si)),
                pl.BlockSpec((1, c_t, 1), lambda bi, ci, si: (bi, ci, 0)),
            ],
            out_specs=pl.BlockSpec((1, c_t, sp_t), lambda bi, ci, si: (bi, ci, si)),
        ),
        compiler_params=pltpu.CompilerParams(
            dimension_semantics=("parallel", "parallel", "parallel"),
            vmem_limit_bytes=vmem_limit,
        ),
    )(xf, gates)
    return out


# --------------------------------------------------------------------------
# Public entry point.
# --------------------------------------------------------------------------
def se_layer(x, w1, w2, *, force_two_pass=False):
    """SE layer forward.

    x:  (B, C, H, W) NCHW input (float32 or bfloat16)
    w1: (C//r, C)   first nn.Linear weight (out, in), bias=False
    w2: (C, C//r)   second nn.Linear weight (out, in), bias=False
    """
    b, c, h, w = x.shape
    hw = h * w
    inv_hw = 1.0 / float(hw)

    xf = x.reshape(b, c, hw)  # lane-dense view (contiguous reshape, free)
    itemsize = jnp.dtype(x.dtype).itemsize

    # Generation-aware VMEM budget (v5e/v6e: 128 MiB physical; v7x: 64 MiB/TC).
    vmem_cap = _vmem_capacity_bytes()
    if vmem_cap >= 96 * 1024 * 1024:
        vmem_limit = 100 * 1024 * 1024
    else:
        vmem_limit = min(48 * 1024 * 1024, (vmem_cap * 3) // 4)

    # Fused feasibility: 2x in + 2x out slab buffers + double-buffered weights
    # + margin for in-kernel intermediates.
    slab_bytes = c * hw * itemsize
    w_bytes = (w1.size * jnp.dtype(w1.dtype).itemsize
               + w2.size * jnp.dtype(w2.dtype).itemsize)
    fused_need = 4 * slab_bytes + 2 * w_bytes + 4 * 1024 * 1024

    if (not force_two_pass) and fused_need <= vmem_limit:
        out = _se_fused(xf, w1, w2, inv_hw, vmem_limit)
    else:
        out = _se_two_pass(xf, w1, w2, inv_hw, vmem_limit, itemsize)

    return out.reshape(b, c, h, w)


def se_layer_ref(x, w1, w2):
    """Pure-JAX reference mirroring the PyTorch module."""
    y = jnp.mean(x.astype(jnp.float32), axis=(2, 3))      # (B, C)
    y = jnp.maximum(y @ w1.T.astype(jnp.float32), 0.0)    # (B, C//r)
    y = jax.nn.sigmoid(y @ w2.T.astype(jnp.float32))      # (B, C)
    return x * y[:, :, None, None].astype(x.dtype)


if __name__ == "__main__":
    # Small shapes consistent with the module: channel=64, reduction=16 -> hidden=4
    B, C, H, W = 2, 64, 32, 32
    reduction = 16
    hid = C // reduction

    key = jax.random.PRNGKey(0)
    kx, k1, k2 = jax.random.split(key, 3)
    x = jax.random.normal(kx, (B, C, H, W), dtype=jnp.float32)
    # nn.Linear weight shapes: (out_features, in_features), bias=False
    w1 = jax.random.normal(k1, (hid, C), dtype=jnp.float32) * 0.1
    w2 = jax.random.normal(k2, (C, hid), dtype=jnp.float32) * 0.1

    ref = se_layer_ref(x, w1, w2)

    # Fused (default) path.
    out_fused = jax.block_until_ready(se_layer(x, w1, w2))
    assert out_fused.shape == (B, C, H, W)
    assert jnp.allclose(out_fused, ref, atol=1e-5, rtol=1e-5)

    # Two-pass fallback path (exercised explicitly so it is also validated).
    out_2p = jax.block_until_ready(se_layer(x, w1, w2, force_two_pass=True))
    assert jnp.allclose(out_2p, ref, atol=1e-5, rtol=1e-5)

    print("KERNEL_OK")
</pallas_src>

<mosaic_0001>
module attributes {stable_mosaic.version = 11 : i64} {
  func.func @kernel(%arg0: i32, %arg1: memref<1x64x1024xf32, #tpu.memory_space<vmem>>, %arg2: memref<4x64xf32, #tpu.memory_space<vmem>>, %arg3: memref<64x4xf32, #tpu.memory_space<vmem>>, %arg4: memref<1x64x1024xf32, #tpu.memory_space<vmem>>) attributes {dimension_semantics = [#tpu.dimension_semantics<parallel>], iteration_bounds = array<i64: 2>, scalar_prefetch = 0 : i64, scratch_operands = 0 : i64, tpu.core_type = #tpu.core_type<tc>, window_params = [{transform_indices = @transform_0, window_bounds = array<i64: 1, 64, 1024>}, {pipeline_mode = #tpu.pipeline_mode<synchronous>, transform_indices = @transform_1, window_bounds = array<i64: 4, 64>}, {pipeline_mode = #tpu.pipeline_mode<synchronous>, transform_indices = @transform_2, window_bounds = array<i64: 64, 4>}, {transform_indices = @transform_3, window_bounds = array<i64: 1, 64, 1024>}]} {
    %c0 = arith.constant 0 : index
    %c0_0 = arith.constant 0 : index
    %c0_1 = arith.constant 0 : index
    %0 = vector.load %arg1[%c0, %c0_0, %c0_1] : memref<1x64x1024xf32, #tpu.memory_space<vmem>>, vector<1x64x1024xf32>
    %1 = vector.shape_cast %0 : vector<1x64x1024xf32> to vector<64x1024xf32>
    %cst = arith.constant dense<0.000000e+00> : vector<64xf32>
    %2 = vector.multi_reduction <add>, %1, %cst [1] : vector<64x1024xf32> to vector<64xf32>
    %3 = vector.shape_cast %2 : vector<64xf32> to vector<64x1xf32>
    %cst_2 = arith.constant 9.765625E-4 : f32
    %4 = vector.broadcast %cst_2 : f32 to vector<64x1xf32>
    %5 = arith.mulf %3, %4 : vector<64x1xf32>
    %c0_3 = arith.constant 0 : index
    %c0_4 = arith.constant 0 : index
    %6 = vector.load %arg2[%c0_3, %c0_4] : memref<4x64xf32, #tpu.memory_space<vmem>>, vector<4x64xf32>
    %cst_5 = arith.constant dense<0.000000e+00> : vector<4x1xf32>
    %7 = tpu.matmul %6, %5, %cst_5 {dimension_numbers = #tpu.dot_dimension_numbers<[1], [0], [0], [1], [0, 0, 1, 1], [], []>} : vector<4x64xf32>, vector<64x1xf32>, vector<4x1xf32> -> vector<4x1xf32>
    %cst_6 = arith.constant 0.000000e+00 : f32
    %8 = vector.broadcast %cst_6 : f32 to vector<4x1xf32>
    %9 = arith.maximumf %7, %8 : vector<4x1xf32>
    %c0_7 = arith.constant 0 : index
    %c0_8 = arith.constant 0 : index
    %10 = vector.load %arg3[%c0_7, %c0_8] : memref<64x4xf32, #tpu.memory_space<vmem>>, vector<64x4xf32>
    %cst_9 = arith.constant dense<0.000000e+00> : vector<64x1xf32>
    %11 = tpu.matmul %10, %9, %cst_9 {dimension_numbers = #tpu.dot_dimension_numbers<[1], [0], [0], [1], [0, 0, 1, 1], [], []>} : vector<64x4xf32>, vector<4x1xf32>, vector<64x1xf32> -> vector<64x1xf32>
    %12 = arith.negf %11 : vector<64x1xf32>
    %13 = math.exp %12 : vector<64x1xf32>
    %cst_10 = arith.constant 1.000000e+00 : f32
    %14 = vector.broadcast %cst_10 : f32 to vector<64x1xf32>
    %15 = arith.addf %14, %13 : vector<64x1xf32>
    %16 = arith.divf %14, %15 : vector<64x1xf32>
    %17 = vector.broadcast %16 : vector<64x1xf32> to vector<64x1024xf32>
    %18 = arith.mulf %1, %17 : vector<64x1024xf32>
    %19 = vector.shape_cast %18 : vector<64x1024xf32> to vector<1x64x1024xf32>
    %c0_11 = arith.constant 0 : index
    %c0_12 = arith.constant 0 : index
    %c0_13 = arith.constant 0 : index
    %20 = vector.load %arg4[%c0_11, %c0_12, %c0_13] : memref<1x64x1024xf32, #tpu.memory_space<vmem>>, vector<1x64x1024xf32>
    tpu.vector_store %arg4[%c0_11, %c0_12, %c0_13], %19 {strides = array<i32>} : memref<1x64x1024xf32, #tpu.memory_space<vmem>>, vector<1x64x1024xf32>,
    return
  }
  func.func @transform_0(%arg0: i32) -> (i32, i32, i32) {
    %c0_i32 = arith.constant 0 : i32
    %c0_i32_0 = arith.constant 0 : i32
    %c0_i32_1 = arith.constant 0 : i32
    return %arg0, %c0_i32, %c0_i32_0 : i32, i32, i32
  }
  func.func @transform_1(%arg0: i32) -> (i32, i32) {
    %c0_i32 = arith.constant 0 : i32
    %c0_i32_0 = arith.constant 0 : i32
    %c0_i32_1 = arith.constant 0 : i32
    return %c0_i32, %c0_i32_0 : i32, i32
  }
  func.func @transform_2(%arg0: i32) -> (i32, i32) {
    %c0_i32 = arith.constant 0 : i32
    %c0_i32_0 = arith.constant 0 : i32
    %c0_i32_1 = arith.constant 0 : i32
    return %c0_i32, %c0_i32_0 : i32, i32
  }
  func.func @transform_3(%arg0: i32) -> (i32, i32, i32) {
    %c0_i32 = arith.constant 0 : i32
    %c0_i32_0 = arith.constant 0 : i32
    %c0_i32_1 = arith.constant 0 : i32
    return %arg0, %c0_i32, %c0_i32_0 : i32, i32, i32
  }
}

</mosaic_0001>

<bundles_post_ra>
// kernel: tpu_custom_call.1
= control target key start
LH: loop header
LB: loop body
LE: loop exit
PB: predicated region body
PF: predicated region fallthrough
CT: control target
= control target key end

     0   :  { %8 = vsyncpa [#allocation3], 0  ;;  %s1731_s0 = inlined_call_operand.hbm [shape: f32[2,64,1024], index: 0, kind: input, shape index: {}]   ;;  %s1732_s1 = inlined_call_operand.vmem [shape: f32[4,64], index: 1, kind: input, shape index: {}]   ;;  %s1733_s2 = inlined_call_operand.vmem [shape: f32[64,4], index: 2, kind: input, shape index: {}]   ;;  %s1734_s3 = inlined_call_operand.hbm [shape: f32[2,64,1024], index: 3, kind: output, shape index: {}]  }
   0x1   :  { %10 = vsyncpa [#allocation3 + $0x1], 0 }
   0x2   :  { %11 = vsyncpa [#allocation4], 0 }
   0x3   :  { %13 = vsyncpa [#allocation4 + $0x1], 0  ;;  %s1149_s12 = smov 0   ;;  %s1151_s13 = smov 0  }
   0x4   :  { %s1153_s14 = smov 0   ;;  %s1155_s15 = smov 0  }
   0x5 LB: > { %s1170_s16 = sadd.s32 4294967295, %s1118_s15   ;;  %s854_s17 = sadd.s32 4294967294, %s1118_s15   ;;  %s1118_s15 = sphi %s1155_s15, %s1797_s15   ;;  %s1114_s14 = sphi %s1153_s14, %s1796_s14   ;;  %s1110_s13 = sphi %s1151_s13, %s1795_s13   ;;  %s1106_s12 = sphi %s1149_s12, %s1794_s12  }
   0x6   : > { %s1174_s18 = sadd.s32 1, %s1118_s15   ;;  %s26_s19 = sadd.s32 1, %s1114_s14 }
   0x7   : > { %s23_s20 = ssub.s32 %s1118_s15, %s1174_s18  ;;  %p33_p0 = scmp.ne.s32.totalorder %s1114_s14, %s1110_s13 }
   0x8   : > { %p24_p1 = scmp.eq.s32.totalorder %s23_s20, 0  ;;  %p34_p2 = scmp.eq.s32.totalorder %s1118_s15, 0 }
   0x9   : > { %p39_p3 = scmp.ne.s32.totalorder %s1110_s13, %s1106_s12  ;;  %p40_p4 = scmp.eq.s32.totalorder %s1170_s16, 0 }
   0xa   : > { %s1186_s21 = scalar_select %p24_p1, %s1114_s14, %s26_s19  }
   0xb   : > { %p1188_p5 = por %p34_p2, %p33_p0  ;;  %p1192_p6 = por %p40_p4, %p39_p3 }
   0xc   : > { %p105_p7 = scmp.eq.s32.totalorder %s1170_s16, 1  ;;  %p111_p8 = scmp.eq.s32.totalorder %s854_s17, 1 }
   0xd   : > { %s1754_s23 = scalar_select %p1192_p6, 1, 0 }
   0xe   : > { %p951_p10 = scmp.lt.s32.totalorder %s1118_s15, 2  ;;  %p1199_p11 = por %p105_p7, %p33_p0 }
   0xf   : > { %p1203_p12 = por %p111_p8, %p39_p3  ;;  %s137_s26 = sand.u32 1, %s1114_s14  }
  0x10   : > { %s1755_s24 = scalar_select %p1199_p11, 1, 0 }
  0x11   : > { %s1756_s25 = scalar_select %p1203_p12, 1, 0 }
  0x12   : > { %s886_s27 = sshll.u32 %s1118_s15, 13  ;;  %s857_s28 = sshll.u32 %s137_s26, 9 }
  0x13   : > { %s1212_s4 = scalar_lea.hbm %s1731_s0, %s886_s27  ;;  %s141_s5 = scalar_lea.vmem [#allocation2], %s857_s28 }
  0x14   : > { %s148_s6 = sshll.u32 %s141_s5, 4  ;;  %p1216_p13 = pnand %p951_p10, %p1188_p5  ;;  %s1220_s6 = int_to_ptr.vmem [resolvable:$true] %s148_s6 }
  0x15   : > { %s1222_s8 = scalar_lea.sflag [#allocation3], %s137_s26  ;;  %s1026_s9 = scalar_lea.hbm %s1212_s4, 8192 }
  0x16   : > { %p1027_p0 = scmp.ne.s32.totalorder %s1212_s4, %s1026_s9  ;;  %p1028_p1 = pneg %p1216_p13 }
  0x17   : > { %s1031_s17 = scalar_lea.hbm %s1731_s0, 16384  ;;  %p1032_p4 = scmp.lt.s32.totalorder %s1212_s4, %s1731_s0 }
  0x18   : > { %p1029_p2 = pnand %p1028_p1, %p1027_p0  ;;  %p1033_p5 = scmp.lt.s32.totalorder %s1031_s17, %s1026_s9 }
  0x1a   : > { %p1030_p3 = pneg %p1029_p2  ;;  %p1034_p7 = por %p1033_p5, %p1032_p4 }
  0x1c   : > { %p1035_p8 = pnand %p1034_p7, %p1030_p3 }
  0x1e   : > { %1038 = shalt.err (!%p1035_p8)
}
  0x1f   : > { %s1039_s22 = scalar_lea.vmem %s1220_s6, 8192  ;;  %s1120_s26 = smov [#allocation2]  }
  0x20   : > { %p1040_p10 = scmp.ne.s32.totalorder %s1220_s6, %s1039_s22  ;;  %s1044_s27 = sshll.u32 %s1120_s26, 4  ;;  %s1045_s27 = int_to_ptr.vmem [resolvable:$false] %s1044_s27 }
  0x21   : > { %s1046_s28 = scalar_lea.vmem %s1045_s27, 16384  ;;  %p1047_p2 = scmp.lt.s32.totalorder %s1220_s6, %s1045_s27 }
  0x22   : > { %p1042_p9 = pnand %p1040_p10, %p1028_p1  ;;  %p1048_p12 = scmp.lt.s32.totalorder %s1046_s28, %s1039_s22 }
  0x24   : > { %p1043_p0 = pneg %p1042_p9  ;;  %p1049_p11 = por %p1048_p12, %p1047_p2 }
  0x26   : > { %p1050_p6 = pnand %p1049_p11, %p1043_p0 }
  0x28   : > { %1053 = shalt.err (!%p1050_p6)
}
  0x29   : > { %s1121_s29 = smov 1024   ;;  %s1122_s30 = smov 64  }
  0x2a   : > { %946 = dma.hbm_to_vmem [thread:$0]  (!%p1216_p13), %s1212_s4, 8192, %s1220_s6, %s1222_s8, %s1121_s29, %s1121_s29, %s1122_s30  }
  0x2b   : > { %p860_p9 = scmp.ge.s32.totalorder %s1118_s15, 1  ;;  %p156_p1 = scmp.lt.s32.totalorder %s1118_s15, 3 }
  0x2d   : > { %p157_p3 = pnand %p860_p9, %p156_p1 }
  0x2f   : > { %160 = sbr.rel (%p157_p3) target bundleno = 824 (0x338), region = 32 }
  0x34   : > { %s1246_s5 = sand.u32 1, %s1110_s13   ;;  %p1758_p6 = scmp.ne.s32.totalorder %s1754_s23, 0 }
  0x35   : > { %s861_s9 = sshll.u32 %s1246_s5, 9  ;;  %s163_s10 = scalar_lea.sflag [#allocation3], %s1246_s5 }
  0x36   : > { %s1252_s11 = scalar_lea.vmem [#allocation2], %s861_s9 }
  0x37   : > { %1097 = dma.done.wait (%p1758_p6), %s163_s10, 8192  }
  0x38   : > { %1099 = vsyncadd (%p1758_p6), %s163_s10, 4294959104  ;;  %v1259_v0 = vld [vmem:[%s1252_s11 + $0x1c0] sm:$0xff]  ;;  %v1262_v1 = vld [vmem:[%s1252_s11 + $0x1c8] sm:$0xff]  ;;  %vm1124_vm0 = vmmov 0   ;;  %vm334_vm1 = vcmask 523264   ;;  %vm417_vm2 = vcmask 31744  }
  0x39   : > { %1759 = vst [vmem:[#allocation8_spill] sm:$0xff] %v1259_v0  ;;  %1760 = vst [vmem:[#allocation9_spill] sm:$0xff] %v1262_v1  ;;  %v1265_v2 = vld [vmem:[%s1252_s11 + $0x1d0] sm:$0xff]  ;;  %v316_v3 = vadd.f32 %v1262_v1, %v1259_v0  ;;  %v1270_v4 = vld [vmem:[%s1252_s11 + $0x1d8] sm:$0xff]  ;;  %vm442_vm3 = vcmask 1043456   ;;  %s1559_s6 = scalar_lea.vmem [#allocation5], %s861_s9 }
  0x3a   : > { %1761 = vst [vmem:[#allocation10_spill] sm:$0xff] %v1265_v2  ;;  %1762 = vst [vmem:[#allocation11_spill] sm:$0xff] %v1270_v4  ;;  %v1273_v5 = vld [vmem:[%s1252_s11 + $0x180] sm:$0xff]  ;;  %v1277_v7 = vld [vmem:[%s1252_s11 + $0x188] sm:$0xff]  ;;  %s887_s9 = sshll.u32 %s1170_s16, 13  ;;  %s781_s7 = sshll.u32 %s1559_s6, 4  ;;  %s1676_s7 = int_to_ptr.vmem [resolvable:$true] %s781_s7 }
  0x3b   : > { %1763 = vst [vmem:[#allocation12_spill] sm:$0xff] %v1273_v5  ;;  %v317_v6 = vadd.f32 %v316_v3, %v1265_v2  ;;  %1764 = vst [vmem:[#allocation13_spill] sm:$0xff] %v1277_v7  ;;  %v1280_v8 = vld [vmem:[%s1252_s11 + $0x190] sm:$0xff]  ;;  %v1283_v9 = vld [vmem:[%s1252_s11 + $0x1e0] sm:$0xff]  ;;  %v307_v10 = vadd.f32 %v1277_v7, %v1273_v5  ;;  %s1674_s17 = scalar_lea.hbm %s1734_s3, %s887_s9  ;;  %s768_s19 = scalar_lea.sflag [#allocation4], %s1246_s5 }
  0x3c   : > { %1765 = vst [vmem:[#allocation14_spill] sm:$0xff] %v1280_v8  ;;  %1766 = vst [vmem:[#allocation15_spill] sm:$0xff] %v1283_v9  ;;  %v1289_v12 = vld [vmem:[%s1252_s11 + $0x198] sm:$0xff]  ;;  %v1292_v13 = vld [vmem:[%s1252_s11 + $0x140] sm:$0xff]  ;;  %s1054_s20 = scalar_lea.vmem %s1676_s7, 8192  ;;  %p1791_p12 = scmp.ne.s32.totalorder %s1755_s24, 0 }
  0x3d   : > { %v318_v11 = vadd.f32 %v317_v6, %v1270_v4  ;;  %1767 = vst [vmem:[#allocation16_spill] sm:$0xff] %v1289_v12  ;;  %v1295_v14 = vld [vmem:[%s1252_s11 + $0x148] sm:$0xff]  ;;  %v308_v16 = vadd.f32 %v307_v10, %v1280_v8  ;;  %v1302_v17 = vld [vmem:[%s1252_s11 + $0x150] sm:$0xff]  ;;  %v1311_v21 = vld [vmem:[%s1252_s11 + $0x1a0] sm:$0xff]  ;;  %p1055_p11 = scmp.ne.s32.totalorder %s1676_s7, %s1054_s20  ;;  %s1126_s22 = smov [#allocation5]  }
  0x3e   : > { %v1298_v15 = vld [vmem:[%s1252_s11 + $0x1e8] sm:$0xff]  ;;  %v298_v18 = vadd.f32 %v1295_v14, %v1292_v13  ;;  %v1307_v19 = vld [vmem:[%s1252_s11 + $0x1f0] sm:$0xff]  ;;  %1770 = vst [vmem:[#allocation19_spill] sm:$0xff] %v1311_v21  ;;  %v1314_v22 = vld [vmem:[%s1252_s11 + $0x158] sm:$0xff]  ;;  %s1058_s26 = sshll.u32 %s1126_s22, 4  ;;  %s1059_s26 = int_to_ptr.vmem [resolvable:$false] %s1058_s26 }
  0x3f   : > { %1768 = vst [vmem:[#allocation17_spill] sm:$0xff] %v1298_v15  ;;  %1769 = vst [vmem:[#allocation18_spill] sm:$0xff] %v1307_v19  ;;  %v319_v20 = vadd.f32 %v318_v11, %v1283_v9  ;;  %v309_v23 = vadd.f32 %v308_v16, %v1289_v12  ;;  %v1319_v25 = vld [vmem:[%s1252_s11 + $0x100] sm:$0xff]  ;;  %v1322_v26 = vld [vmem:[%s1252_s11 + $0x108] sm:$0xff]  ;;  %p1056_p13 = pnand %p1055_p11, %p1791_p12  ;;  %s1060_s27 = scalar_lea.vmem %s1059_s26, 16384 }
  0x40   : > { %v299_v24 = vadd.f32 %v298_v18, %v1302_v17  ;;  %v1325_v27 = vld [vmem:[%s1252_s11 + $0x110] sm:$0xff]  ;;  %v1328_v28 = vld [vmem:[%s1252_s11 + $0x1f8] sm:$0xff]  ;;  %v1332_v30 = vld [vmem:[%s1252_s11 + $0x1a8] sm:$0xff]  ;;  %v289_v32 = vadd.f32 %v1322_v26, %v1319_v25  ;;  %p1061_p5 = scmp.lt.s32.totalorder %s1676_s7, %s1059_s26  ;;  %p1062_p7 = scmp.lt.s32.totalorder %s1060_s27, %s1054_s20 }
  0x41   : > { %1771 = vst [vmem:[#allocation20_spill] sm:$0xff] %v1328_v28  ;;  %v320_v29 = vadd.f32 %v319_v20, %v1298_v15  ;;  %1772 = vst [vmem:[#allocation21_spill] sm:$0xff] %v1332_v30  ;;  %v1335_v31 = vld [vmem:[%s1252_s11 + $0x160] sm:$0xff]  ;;  %v1340_v33 = vld [vmem:[%s1252_s11 + $0x1b0] sm:$0xff]  ;;  %v310_v34 = vadd.f32 %v309_v23, %v1311_v21  ;;  %p1057_p4 = pneg %p1056_p13 }
  0x42   : > { %1773 = vst [vmem:[#allocation22_spill] sm:$0xff] %v1340_v33  ;;  %v300_v35 = vadd.f32 %v299_v24, %v1314_v22  ;;  %v1345_v36 = vld [vmem:[%s1252_s11 + $0x118] sm:$0xff]  ;;  %v1348_v37 = vld [vmem:[%s1252_s11 + $0xc0] sm:$0xff]  ;;  %v1352_v39 = vld [vmem:[%s1252_s11 + $0x168] sm:$0xff]  ;;  %v290_v40 = vadd.f32 %v289_v32, %v1325_v27  ;;  %p1063_p8 = por %p1062_p7, %p1061_p5 }
  0x43   : > { %v321_v38 = vadd.f32 %v320_v29, %v1307_v19  ;;  %v1356_v41 = vld [vmem:[%s1252_s11 + $0xc8] sm:$0xff]  ;;  %v1359_v42 = vld [vmem:[%s1252_s11 + $0xd0] sm:$0xff]  ;;  %v1362_v43 = vld [vmem:[%s1252_s11 + $0x1b8] sm:$0xff]  ;;  %v311_v44 = vadd.f32 %v310_v34, %v1332_v30 }
  0x44   : > { %1774 = vst [vmem:[#allocation23_spill] sm:$0xff] %v1362_v43  ;;  %v1366_v45 = vld [vmem:[%s1252_s11 + $0x170] sm:$0xff]  ;;  %v301_v46 = vadd.f32 %v300_v35, %v1335_v31  ;;  %v1370_v47 = vld [vmem:[%s1252_s11 + $0x120] sm:$0xff]  ;;  %v280_v48 = vadd.f32 %v1356_v41, %v1348_v37  ;;  %v291_v50 = vadd.f32 %v290_v40, %v1345_v36  ;;  %v1377_v51 = vld [vmem:[%s1252_s11 + $0xd8] sm:$0xff]  ;;  %p1064_p10 = pnand %p1063_p8, %p1057_p4 }
  0x45   : > { %v322_v49 = vadd.f32 %v321_v38, %v1328_v28  ;;  %v1380_v52 = vld [vmem:[%s1252_s11 + $0x80] sm:$0xff]  ;;  %v1383_v53 = vld [vmem:[%s1252_s11 + $0x88] sm:$0xff]  ;;  %v312_v54 = vadd.f32 %v311_v44, %v1340_v33  ;;  %v1387_v55 = vld [vmem:[%s1252_s11 + $0x178] sm:$0xff] }
  0x46   : > { %v302_v56 = vadd.f32 %v301_v46, %v1352_v39  ;;  %v1391_v57 = vld [vmem:[%s1252_s11 + $0x128] sm:$0xff]  ;;  %v281_v58 = vadd.f32 %v280_v48, %v1359_v42  ;;  %v1395_v59 = vld [vmem:[%s1252_s11 + $0x90] sm:$0xff]  ;;  %v271_v60 = vadd.f32 %v1383_v53, %v1380_v52  ;;  %v292_v62 = vadd.f32 %v291_v50, %v1370_v47  ;;  %v1404_v63 = vld [vmem:[%s1252_s11 + $0xe0] sm:$0xff] }
  0x47   : > { %323 = vadd.xlane.f32.xlu0 %v322_v49  ;;  %v1400_v61 = vld [vmem:[%s1252_s11 + $0x130] sm:$0xff]  ;;  %v1407_v3 = vld [vmem:[%s1252_s11 + $0x98] sm:$0xff]  ;;  %v313_v6 = vadd.f32 %v312_v54, %v1362_v43  ;;  %v1414_v18 = vld [vmem:[%s1252_s11 + $0x40] sm:$0xff]  ;;  %v1123_v43 = vmov 0.0  }
  0x48   : > { %v303_v10 = vadd.f32 %v302_v56, %v1366_v45  ;;  %v282_v11 = vadd.f32 %v281_v58, %v1377_v51  ;;  %v272_v16 = vadd.f32 %v271_v60, %v1395_v59  ;;  %v1417_v20 = vld [vmem:[%s1252_s11 + $0x48] sm:$0xff]  ;;  %v1420_v23 = vld [vmem:[%s1252_s11 + $0x50] sm:$0xff]  ;;  %v1423_v24 = vld [vmem:[%s1252_s11 + $0x138] sm:$0xff]  ;;  %v293_v29 = vadd.f32 %v292_v62, %v1391_v57  ;;  %906 = vmatprep.subr.mxu0 %v1123_v43 }
  0x49   : > { %v1427_v32 = vld [vmem:[%s1252_s11 + $0xe8] sm:$0xff]  ;;  %v1430_v34 = vld [vmem:[%s1252_s11 + $0xa0] sm:$0xff]  ;;  %v262_v35 = vadd.f32 %v1417_v20, %v1414_v18  ;;  %v1436_v40 = vld [vmem:[%s1252_s11 + $0xf0] sm:$0xff]  ;;  %922 = vmatprep.mubr.msk.f32.mxu0 %vm1124_vm0, %v1123_v43 }
  0x4a   : > { %v304_v38 = vadd.f32 %v303_v10, %v1387_v55  ;;  %v283_v44 = vadd.f32 %v282_v11, %v1404_v63  ;;  %v273_v46 = vadd.f32 %v272_v16, %v1407_v3  ;;  %v1441_v48 = vld [vmem:[%s1252_s11 + $0x58] sm:$0xff]  ;;  %v1444_v49 = vld [vmem:[%s1252_s11] sm:$0xff]  ;;  %v294_v50 = vadd.f32 %v293_v29, %v1400_v61  ;;  %v1448_v54 = vld [vmem:[%s1252_s11 + $0xa8] sm:$0xff] }
  0x4b   : > { %314 = vadd.xlane.f32.xlu0 %v313_v6  ;;  %v263_v56 = vadd.f32 %v262_v35, %v1420_v23  ;;  %v1452_v58 = vld [vmem:[%s1252_s11 + $0x8] sm:$0xff]  ;;  %v1455_v60 = vld [vmem:[%s1252_s11 + $0x10] sm:$0xff]  ;;  %v1460_v11 = vld [vmem:[%s1252_s11 + $0x60] sm:$0xff] }
  0x4c   : > { %305 = vadd.xlane.f32.xlu1 %v304_v38  ;;  %v284_v62 = vadd.f32 %v283_v44, %v1427_v32  ;;  %v274_v10 = vadd.f32 %v273_v46, %v1430_v34  ;;  %v253_v6 = vadd.f32 %v1452_v58, %v1444_v49  ;;  %v295_v16 = vadd.f32 %v294_v50, %v1423_v24  ;;  %v1466_v29 = vld [vmem:[%s1252_s11 + $0xf8] sm:$0xff]  ;;  %v1469_v35 = vld [vmem:[%s1252_s11 + $0xb0] sm:$0xff]  ;;  %v1478_v19 = vld [vmem:[%s1252_s11 + $0x68] sm:$0xff] }
  0x4d   : > { %v264_v38 = vadd.f32 %v263_v56, %v1441_v48  ;;  %v1473_v28 = vld [vmem:[%s1252_s11 + $0x18] sm:$0xff]  ;;  %v1486_v4 = vld [vmem:[%s1252_s11 + $0x20] sm:$0xff] }
  0x4e   : > { %v285_v44 = vadd.f32 %v284_v62, %v1436_v40  ;;  %v275_v46 = vadd.f32 %v274_v10, %v1448_v54  ;;  %v254_v15 = vadd.f32 %v253_v6, %v1455_v60  ;;  %v1482_v9 = vld [vmem:[%s1252_s11 + $0xb8] sm:$0xff]  ;;  %v1491_v62 = vld [vmem:[%s1252_s11 + $0x70] sm:$0xff]  ;;  %v1496_v6 = vld [vmem:[%s1252_s11 + $0x28] sm:$0xff] }
  0x4f   : > { %v265_v50 = vadd.f32 %v264_v38, %v1460_v11  ;;  %v1500_v0 = vld [vmem:[%s1252_s11 + $0x78] sm:$0xff] }
  0x50   : > { %296 = vadd.xlane.f32.xlu1 %v295_v16  ;;  %v286_v56 = vadd.f32 %v285_v44, %v1466_v29  ;;  %v276_v2 = vadd.f32 %v275_v46, %v1469_v35  ;;  %v255_v10 = vadd.f32 %v254_v15, %v1473_v28  ;;  %v1505_v46 = vld [vmem:[%s1252_s11 + $0x30] sm:$0xff]  ;;  %v1510_v33 = vld [vmem:[%s1252_s11 + $0x38] sm:$0xff] }
  0x51   : > { %v266_v1 = vadd.f32 %v265_v50, %v1478_v19 }
  0x52   : > { %287 = vadd.xlane.f32.xlu0 %v286_v56  ;;  %v277_v38 = vadd.f32 %v276_v2, %v1482_v9  ;;  %v256_v16 = vadd.f32 %v255_v10, %v1486_v4 }
  0x53   : > { %v267_v44 = vadd.f32 %v266_v1, %v1491_v62 }
  0x54   : > { %278 = vadd.xlane.f32.xlu1 %v277_v38  ;;  %v257_v15 = vadd.f32 %v256_v16, %v1496_v6 }
  0x55   : > { %v268_v50 = vadd.f32 %v267_v44, %v1500_v0 }
  0x56   : > { %v258_v56 = vadd.f32 %v257_v15, %v1505_v46 }
  0x57   : > { %269 = vadd.xlane.f32.xlu0 %v268_v50 }
  0x58   : > { %v259_v2 = vadd.f32 %v258_v56, %v1510_v33 }
  0x5a   : > { %260 = vadd.xlane.f32.xlu1 %v259_v2 }
  0xd0   : > { %v324_v10 = vpop.xlane.xlu0 %323 }
  0xd1   : > { %v332_v30 = vmul.f32 0.0009765625, %v324_v10 }
  0xd3   : > { %907 = vmatpush3.msra.mxu0 %v332_v30 }
  0xd4   : > { %v315_v1 = vpop.xlane.xlu0 %314  ;;  %908 = vmatprep.subr.mxu0 %v1123_v43 }
  0xd5   : > { %v331_v38 = vmul.f32 0.0009765625, %v315_v1  ;;  %v306_v21 = vpop.xlane.xlu1 %305 }
  0xd6   : > { %v330_v16 = vmul.f32 0.0009765625, %v306_v21 }
  0xd7   : > { %909 = vmatpush3.msra.mxu0 %v331_v38  ;;  %v333_v38 = vld [vmem:[%s1732_s1] sm:$0xf] }
  0xd8   : > { %910 = vmatprep.subr.mxu0 %v1123_v43 }
  0xd9   : > { %v297_v44 = vpop.xlane.xlu1 %296  ;;  %911 = vmatpush3.msra.mxu0 %v330_v16 }
  0xda   : > { %v329_v12 = vmul.f32 0.0009765625, %v297_v44  ;;  %912 = vmatprep.subr.mxu0 %v1123_v43 }
  0xdb   : > { %v288_v15 = vpop.xlane.xlu0 %287 }
  0xdc   : > { %v328_v50 = vmul.f32 0.0009765625, %v288_v15  ;;  %913 = vmatpush3.msra.mxu0 %v329_v12  ;;  %v409_v12 = vld [vmem:[%s1733_s2] sm:$0xff] }
  0xdd   : > { %914 = vmatprep.subr.mxu0 %v1123_v43  ;;  %v279_v56 = vpop.xlane.xlu1 %278  ;;  %927 = vmatprep.mubr.msk.f32.mxu1 %vm417_vm2, %v409_v12 }
  0xde   : > { %v327_v2 = vmul.f32 0.0009765625, %v279_v56  ;;  %915 = vmatpush3.msra.mxu0 %v328_v50  ;;  %v411_v50 = vld [vmem:[%s1733_s2 + $0x10] sm:$0xff]  ;;  %v412_v56 = vld [vmem:[%s1733_s2 + $0x18] sm:$0xff] }
  0xdf   : > { %916 = vmatprep.subr.mxu0 %v1123_v43 }
  0xe0   : > { %v270_v30 = vpop.xlane.xlu0 %269  ;;  %917 = vmatpush3.msra.mxu0 %v327_v2  ;;  %v413_v2 = vld [vmem:[%s1733_s2 + $0x20] sm:$0xff] }
  0xe1   : > { %v326_v10 = vmul.f32 0.0009765625, %v270_v30  ;;  %918 = vmatprep.subr.mxu0 %v1123_v43  ;;  %v414_v30 = vld [vmem:[%s1733_s2 + $0x28] sm:$0xff] }
  0xe3   : > { %v261_v1 = vpop.xlane.xlu1 %260  ;;  %919 = vmatpush3.msra.mxu0 %v326_v10  ;;  %v415_v10 = vld [vmem:[%s1733_s2 + $0x30] sm:$0xff] }
  0xe4   : > { %v325_v21 = vmul.f32 0.0009765625, %v261_v1  ;;  %920 = vmatprep.subr.mxu0 %v1123_v43  ;;  %v410_v43 = vld [vmem:[%s1733_s2 + $0x8] sm:$0xff]  ;;  %v416_v1 = vld [vmem:[%s1733_s2 + $0x38] sm:$0xff] }
  0xe6   : > { %921 = vmatpush3.msra.mxu0 %v325_v21  ;;  %v1125_v21 = vmov 0  }
  0xe7   : > { %923 = vmatmul.mubr.msk.f32.vlgmr.msra.gmra.mxu0 %vm334_vm1, %v333_v38  ;;  %993 = vset.pattern.permute.xlu1 %v1125_v21 }
  0xe8   : > { %992 = vset.pattern.permute.xlu0 %v1125_v21 }
 0x1a7   : > { %v404_v16 = vpop.f32.mrf.mxu0 }
 0x1a8   : > { %v408_v44 = vmax.f32 %v404_v16, 0.0 }
 0x1a9   : > { %v924_v15 = vpop.f32.mrf.mxu0 }
 0x1aa   : > { %925 = vmatprep.subr.msk.mxu1 %vm442_vm3, %v408_v44 }
 0x1ab   : > { %926 = vmatpush3.msk.msra.mxu1 %vm442_vm3, %v408_v44 }
 0x1ac   : > { %928 = vmatmul.mubr.msk.f32.vlgmr.msra.gmra.mxu1 %vm417_vm2, %v410_v43 }
 0x1ad   : > { %930 = vmatprep.mubr.msk.f32.mxu1 %vm417_vm2, %v411_v50 }
 0x1b0   : > { %931 = vmatmul.mubr.msk.f32.gmra.mxu1 %vm417_vm2, %v412_v56 }
 0x1b1   : > { %933 = vmatprep.mubr.msk.f32.mxu1 %vm417_vm2, %v413_v2 }
 0x1b4   : > { %934 = vmatmul.mubr.msk.f32.gmra.mxu1 %vm417_vm2, %v414_v30 }
 0x1b5   : > { %936 = vmatprep.mubr.msk.f32.mxu1 %vm417_vm2, %v415_v10 }
 0x1b8   : > { %937 = vmatmul.mubr.msk.f32.gmra.mxu1 %vm417_vm2, %v416_v1 }
 0x26c   : > { %v929_v38 = vpop.f32.mrf.mxu1 }
 0x26d   : > { %v874_v12 = vmul.f32 -1.442695, %v929_v38 }
 0x26e   : > { %v512_v16 = vpop.f32.mrf.mxu1 }
 0x26f   : > { %994 = vpow2.f32 %v874_v12  ;;  %v873_v44 = vmul.f32 -1.442695, %v512_v16 }
 0x270   : > { %v932_v15 = vpop.f32.mrf.mxu1 }
 0x271   : > { %996 = vpow2.f32 %v873_v44  ;;  %v876_v43 = vmul.f32 -1.442695, %v932_v15 }
 0x272   : > { %v522_v50 = vpop.f32.mrf.mxu1 }
 0x273   : > { %998 = vpow2.f32 %v876_v43  ;;  %v875_v56 = vmul.f32 -1.442695, %v522_v50 }
 0x274   : > { %v935_v2 = vpop.f32.mrf.mxu1 }
 0x275   : > { %1000 = vpow2.f32 %v875_v56  ;;  %v878_v30 = vmul.f32 -1.442695, %v935_v2 }
 0x276   : > { %v532_v10 = vpop.f32.mrf.mxu1 }
 0x277   : > { %1002 = vpow2.f32 %v878_v30  ;;  %v877_v1 = vmul.f32 -1.442695, %v532_v10 }
 0x278   : > { %v938_v8 = vpop.f32.mrf.mxu1 }
 0x279   : > { %1004 = vpow2.f32 %v877_v1  ;;  %v880_v16 = vmul.f32 -1.442695, %v938_v8 }
 0x27a   : > { %v542_v7 = vpop.f32.mrf.mxu1 }
 0x27b   : > { %v879_v21 = vmul.f32 -1.442695, %v542_v7 }
 0x27c   : > { %v995_v38 = vpop.eup %994 }
 0x27d   : > { %v576_v5 = vadd.f32 1.0, %v995_v38  ;;  %1006 = vpow2.f32 %v879_v21 }
 0x27e   : > { %v997_v12 = vpop.eup %996 }
 0x27f   : > { %1008 = vrcp.f32 %v576_v5  ;;  %v575_v44 = vadd.f32 1.0, %v997_v12 }
 0x280   : > { %v999_v15 = vpop.eup %998 }
 0x281   : > { %1010 = vrcp.f32 %v575_v44  ;;  %v578_v43 = vadd.f32 1.0, %v999_v15 }
 0x282   : > { %v1001_v50 = vpop.eup %1000  ;;  %1012 = vpow2.f32 %v880_v16 }
 0x283   : > { %1014 = vrcp.f32 %v578_v43  ;;  %v577_v56 = vadd.f32 1.0, %v1001_v50 }
 0x284   : > { %v1003_v2 = vpop.eup %1002 }
 0x285   : > { %v580_v30 = vadd.f32 1.0, %v1003_v2  ;;  %1016 = vrcp.f32 %v577_v56 }
 0x286   : > { %v1005_v10 = vpop.eup %1004 }
 0x287   : > { %1018 = vrcp.f32 %v580_v30  ;;  %v579_v1 = vadd.f32 1.0, %v1005_v10 }
 0x289   : > { %1020 = vrcp.f32 %v579_v1 }
 0x28a   : > { %v1007_v7 = vpop.eup %1006 }
 0x28b   : > { %v581_v5 = vadd.f32 1.0, %v1007_v7 }
 0x28c   : > { %v1009_v38 = vpop.eup %1008 }
 0x28d   : > { %606 = vperm.xlu1 %993, %v1009_v38   ;;  %1022 = vrcp.f32 %v581_v5 }
 0x28e   : > { %v1011_v8 = vpop.eup %1010 }
 0x28f   : > { %v1013_v21 = vpop.eup %1012  ;;  %601 = vperm.xlu0 %992, %v1011_v8  }
 0x290   : > { %v1015_v12 = vpop.eup %1014  ;;  %v582_v44 = vadd.f32 1.0, %v1013_v21 }
 0x291   : > { %616 = vperm.xlu1 %993, %v1015_v12  }
 0x292   : > { %v1017_v16 = vpop.eup %1016  ;;  %1024 = vrcp.f32 %v582_v44 }
 0x294   : > { %v1019_v15 = vpop.eup %1018 }
 0x295   : > { %611 = vperm.xlu1 %993, %v1017_v16  }
 0x296   : > { %v1021_v43 = vpop.eup %1020 }
 0x299   : > { %626 = vperm.xlu1 %993, %v1019_v15  }
 0x29a   : > { %v1023_v50 = vpop.eup %1022 }
 0x29d   : > { %621 = vperm.xlu1 %993, %v1021_v43  }
 0x29f   : > { %v1025_v56 = vpop.eup %1024 }
 0x2a1   : > { %631 = vperm.xlu1 %993, %v1023_v50  }
 0x2a5   : > { %636 = vperm.xlu1 %993, %v1025_v56   ;;  %v1779_v56 = vld [vmem:[#allocation19_spill] sm:$0xff] }
 0x308   : > { %v607_v2 = vpop.permute.xlu1 %606 }
 0x309   : > { %v647_v30 = vmul.f32 %v607_v2, %v1414_v18  ;;  %v648_v10 = vmul.f32 %v607_v2, %v1417_v20  ;;  %v649_v7 = vmul.f32 %v607_v2, %v1420_v23  ;;  %v650_v1 = vmul.f32 %v607_v2, %v1441_v48 }
 0x30a   : > { %v651_v38 = vmul.f32 %v607_v2, %v1460_v11  ;;  %v652_v8 = vmul.f32 %v607_v2, %v1478_v19  ;;  %v653_v21 = vmul.f32 %v607_v2, %v1491_v62  ;;  %v654_v5 = vmul.f32 %v607_v2, %v1500_v0  ;;  %v602_v12 = vpop.permute.xlu0 %601 }
 0x30b   : > { %711 = vst [vmem:[%s1559_s6 + $0x40] sm:$0xff] %v647_v30  ;;  %712 = vst [vmem:[%s1559_s6 + $0x48] sm:$0xff] %v648_v10  ;;  %v639_v0 = vmul.f32 %v602_v12, %v1444_v49  ;;  %v640_v19 = vmul.f32 %v602_v12, %v1452_v58  ;;  %v641_v18 = vmul.f32 %v602_v12, %v1455_v60  ;;  %v1780_v30 = vld [vmem:[#allocation21_spill] sm:$0xff] }
 0x30c   : > { %713 = vst [vmem:[%s1559_s6 + $0x50] sm:$0xff] %v649_v7  ;;  %714 = vst [vmem:[%s1559_s6 + $0x58] sm:$0xff] %v650_v1  ;;  %v642_v20 = vmul.f32 %v602_v12, %v1473_v28  ;;  %v643_v23 = vmul.f32 %v602_v12, %v1486_v4  ;;  %v644_v48 = vmul.f32 %v602_v12, %v1496_v6  ;;  %v617_v11 = vpop.permute.xlu1 %616  ;;  %v1781_v7 = vld [vmem:[#allocation22_spill] sm:$0xff] }
 0x30d   : > { %715 = vst [vmem:[%s1559_s6 + $0x60] sm:$0xff] %v651_v38  ;;  %716 = vst [vmem:[%s1559_s6 + $0x68] sm:$0xff] %v652_v8  ;;  %v645_v49 = vmul.f32 %v602_v12, %v1505_v46  ;;  %v646_v58 = vmul.f32 %v602_v12, %v1510_v33  ;;  %v663_v28 = vmul.f32 %v617_v11, %v1348_v37  ;;  %v1782_v38 = vld [vmem:[#allocation23_spill] sm:$0xff] }
 0x30e   : > { %717 = vst [vmem:[%s1559_s6 + $0x70] sm:$0xff] %v653_v21  ;;  %718 = vst [vmem:[%s1559_s6 + $0x78] sm:$0xff] %v654_v5  ;;  %v664_v4 = vmul.f32 %v617_v11, %v1356_v41  ;;  %v665_v60 = vmul.f32 %v617_v11, %v1359_v42  ;;  %v666_v33 = vmul.f32 %v617_v11, %v1377_v51  ;;  %v1783_v5 = vld [vmem:[#allocation8_spill] sm:$0xff] }
 0x30f   : > { %703 = vst [vmem:[%s1559_s6] sm:$0xff] %v639_v0  ;;  %704 = vst [vmem:[%s1559_s6 + $0x8] sm:$0xff] %v640_v19  ;;  %v667_v62 = vmul.f32 %v617_v11, %v1404_v63  ;;  %v668_v6 = vmul.f32 %v617_v11, %v1427_v32  ;;  %v669_v37 = vmul.f32 %v617_v11, %v1436_v40  ;;  %v1784_v0 = vld [vmem:[#allocation9_spill] sm:$0xff] }
 0x310   : > { %705 = vst [vmem:[%s1559_s6 + $0x10] sm:$0xff] %v641_v18  ;;  %706 = vst [vmem:[%s1559_s6 + $0x18] sm:$0xff] %v642_v20  ;;  %v670_v46 = vmul.f32 %v617_v11, %v1466_v29  ;;  %v612_v41 = vpop.permute.xlu1 %611  ;;  %v1785_v18 = vld [vmem:[#allocation10_spill] sm:$0xff]  ;;  %v1788_v11 = vld [vmem:[#allocation17_spill] sm:$0xff] }
 0x311   : > { %707 = vst [vmem:[%s1559_s6 + $0x20] sm:$0xff] %v643_v23  ;;  %708 = vst [vmem:[%s1559_s6 + $0x28] sm:$0xff] %v644_v48  ;;  %v655_v42 = vmul.f32 %v612_v41, %v1380_v52  ;;  %v656_v51 = vmul.f32 %v612_v41, %v1383_v53  ;;  %v657_v63 = vmul.f32 %v612_v41, %v1395_v59  ;;  %v1786_v23 = vld [vmem:[#allocation11_spill] sm:$0xff] }
 0x312   : > { %709 = vst [vmem:[%s1559_s6 + $0x30] sm:$0xff] %v645_v49  ;;  %710 = vst [vmem:[%s1559_s6 + $0x38] sm:$0xff] %v646_v58  ;;  %v658_v32 = vmul.f32 %v612_v41, %v1407_v3  ;;  %v659_v40 = vmul.f32 %v612_v41, %v1430_v34  ;;  %v660_v29 = vmul.f32 %v612_v41, %v1448_v54  ;;  %v1787_v49 = vld [vmem:[#allocation15_spill] sm:$0xff] }
 0x313   : > { %727 = vst [vmem:[%s1559_s6 + $0xc0] sm:$0xff] %v663_v28  ;;  %728 = vst [vmem:[%s1559_s6 + $0xc8] sm:$0xff] %v664_v4  ;;  %v661_v44 = vmul.f32 %v612_v41, %v1469_v35  ;;  %v662_v16 = vmul.f32 %v612_v41, %v1482_v9  ;;  %v1789_v4 = vld [vmem:[#allocation18_spill] sm:$0xff] }
 0x314   : > { %729 = vst [vmem:[%s1559_s6 + $0xd0] sm:$0xff] %v665_v60  ;;  %730 = vst [vmem:[%s1559_s6 + $0xd8] sm:$0xff] %v666_v33  ;;  %v627_v52 = vpop.permute.xlu1 %626  ;;  %v1790_v33 = vld [vmem:[#allocation20_spill] sm:$0xff] }
 0x315   : > { %731 = vst [vmem:[%s1559_s6 + $0xe0] sm:$0xff] %v667_v62  ;;  %732 = vst [vmem:[%s1559_s6 + $0xe8] sm:$0xff] %v668_v6  ;;  %v679_v53 = vmul.f32 %v627_v52, %v1292_v13  ;;  %v680_v9 = vmul.f32 %v627_v52, %v1295_v14  ;;  %v681_v59 = vmul.f32 %v627_v52, %v1302_v17 }
 0x316   : > { %733 = vst [vmem:[%s1559_s6 + $0xf0] sm:$0xff] %v669_v37  ;;  %734 = vst [vmem:[%s1559_s6 + $0xf8] sm:$0xff] %v670_v46  ;;  %v682_v3 = vmul.f32 %v627_v52, %v1314_v22  ;;  %v683_v34 = vmul.f32 %v627_v52, %v1335_v31  ;;  %v684_v54 = vmul.f32 %v627_v52, %v1352_v39 }
 0x317   : > { %719 = vst [vmem:[%s1559_s6 + $0x80] sm:$0xff] %v655_v42  ;;  %720 = vst [vmem:[%s1559_s6 + $0x88] sm:$0xff] %v656_v51  ;;  %v685_v35 = vmul.f32 %v627_v52, %v1366_v45  ;;  %v686_v15 = vmul.f32 %v627_v52, %v1387_v55 }
 0x318   : > { %721 = vst [vmem:[%s1559_s6 + $0x90] sm:$0xff] %v657_v63  ;;  %722 = vst [vmem:[%s1559_s6 + $0x98] sm:$0xff] %v658_v32  ;;  %v622_v13 = vpop.permute.xlu1 %621 }
 0x319   : > { %723 = vst [vmem:[%s1559_s6 + $0xa0] sm:$0xff] %v659_v40  ;;  %724 = vst [vmem:[%s1559_s6 + $0xa8] sm:$0xff] %v660_v29  ;;  %v671_v14 = vmul.f32 %v622_v13, %v1319_v25  ;;  %v672_v17 = vmul.f32 %v622_v13, %v1322_v26  ;;  %v673_v22 = vmul.f32 %v622_v13, %v1325_v27  ;;  %v1775_v26 = vld [vmem:[#allocation12_spill] sm:$0xff] }
 0x31a   : > { %725 = vst [vmem:[%s1559_s6 + $0xb0] sm:$0xff] %v661_v44  ;;  %726 = vst [vmem:[%s1559_s6 + $0xb8] sm:$0xff] %v662_v16  ;;  %v674_v31 = vmul.f32 %v622_v13, %v1345_v36  ;;  %v675_v39 = vmul.f32 %v622_v13, %v1370_v47  ;;  %v676_v45 = vmul.f32 %v622_v13, %v1391_v57  ;;  %v1776_v36 = vld [vmem:[#allocation13_spill] sm:$0xff]  ;;  %v1777_v57 = vld [vmem:[#allocation14_spill] sm:$0xff] }
 0x31b   : > { %743 = vst [vmem:[%s1559_s6 + $0x140] sm:$0xff] %v679_v53  ;;  %744 = vst [vmem:[%s1559_s6 + $0x148] sm:$0xff] %v680_v9  ;;  %v677_v55 = vmul.f32 %v622_v13, %v1400_v61  ;;  %v678_v43 = vmul.f32 %v622_v13, %v1423_v24  ;;  %v1778_v24 = vld [vmem:[#allocation16_spill] sm:$0xff] }
 0x31c   : > { %745 = vst [vmem:[%s1559_s6 + $0x150] sm:$0xff] %v681_v59  ;;  %746 = vst [vmem:[%s1559_s6 + $0x158] sm:$0xff] %v682_v3  ;;  %v632_v25 = vpop.permute.xlu1 %631 }
 0x31d   : > { %747 = vst [vmem:[%s1559_s6 + $0x160] sm:$0xff] %v683_v34  ;;  %748 = vst [vmem:[%s1559_s6 + $0x168] sm:$0xff] %v684_v54  ;;  %v687_v27 = vmul.f32 %v632_v25, %v1775_v26  ;;  %v688_v47 = vmul.f32 %v632_v25, %v1776_v36  ;;  %v689_v61 = vmul.f32 %v632_v25, %v1777_v57 }
 0x31e   : > { %749 = vst [vmem:[%s1559_s6 + $0x170] sm:$0xff] %v685_v35  ;;  %750 = vst [vmem:[%s1559_s6 + $0x178] sm:$0xff] %v686_v15  ;;  %v690_v50 = vmul.f32 %v632_v25, %v1778_v24  ;;  %v691_v2 = vmul.f32 %v632_v25, %v1779_v56  ;;  %v692_v10 = vmul.f32 %v632_v25, %v1780_v30 }
 0x31f   : > { %735 = vst [vmem:[%s1559_s6 + $0x100] sm:$0xff] %v671_v14  ;;  %736 = vst [vmem:[%s1559_s6 + $0x108] sm:$0xff] %v672_v17  ;;  %v693_v1 = vmul.f32 %v632_v25, %v1781_v7  ;;  %v694_v8 = vmul.f32 %v632_v25, %v1782_v38 }
 0x320   : > { %737 = vst [vmem:[%s1559_s6 + $0x110] sm:$0xff] %v673_v22  ;;  %738 = vst [vmem:[%s1559_s6 + $0x118] sm:$0xff] %v674_v31  ;;  %v637_v21 = vpop.permute.xlu1 %636 }
 0x321   : > { %739 = vst [vmem:[%s1559_s6 + $0x120] sm:$0xff] %v675_v39  ;;  %740 = vst [vmem:[%s1559_s6 + $0x128] sm:$0xff] %v676_v45  ;;  %v695_v12 = vmul.f32 %v637_v21, %v1783_v5  ;;  %v696_v19 = vmul.f32 %v637_v21, %v1784_v0  ;;  %v697_v20 = vmul.f32 %v637_v21, %v1785_v18 }
 0x322   : > { %741 = vst [vmem:[%s1559_s6 + $0x130] sm:$0xff] %v677_v55  ;;  %742 = vst [vmem:[%s1559_s6 + $0x138] sm:$0xff] %v678_v43  ;;  %v698_v48 = vmul.f32 %v637_v21, %v1786_v23  ;;  %v699_v58 = vmul.f32 %v637_v21, %v1787_v49  ;;  %v700_v28 = vmul.f32 %v637_v21, %v1788_v11 }
 0x323   : > { %751 = vst [vmem:[%s1559_s6 + $0x180] sm:$0xff] %v687_v27  ;;  %752 = vst [vmem:[%s1559_s6 + $0x188] sm:$0xff] %v688_v47  ;;  %v701_v60 = vmul.f32 %v637_v21, %v1789_v4  ;;  %v702_v62 = vmul.f32 %v637_v21, %v1790_v33 }
 0x324   : > { %753 = vst [vmem:[%s1559_s6 + $0x190] sm:$0xff] %v689_v61  ;;  %754 = vst [vmem:[%s1559_s6 + $0x198] sm:$0xff] %v690_v50 }
 0x325   : > { %755 = vst [vmem:[%s1559_s6 + $0x1a0] sm:$0xff] %v691_v2  ;;  %756 = vst [vmem:[%s1559_s6 + $0x1a8] sm:$0xff] %v692_v10 }
 0x326   : > { %757 = vst [vmem:[%s1559_s6 + $0x1b0] sm:$0xff] %v693_v1  ;;  %758 = vst [vmem:[%s1559_s6 + $0x1b8] sm:$0xff] %v694_v8 }
 0x327   : > { %759 = vst [vmem:[%s1559_s6 + $0x1c0] sm:$0xff] %v695_v12  ;;  %760 = vst [vmem:[%s1559_s6 + $0x1c8] sm:$0xff] %v696_v19 }
 0x328   : > { %761 = vst [vmem:[%s1559_s6 + $0x1d0] sm:$0xff] %v697_v20  ;;  %762 = vst [vmem:[%s1559_s6 + $0x1d8] sm:$0xff] %v698_v48 }
 0x329   : > { %763 = vst [vmem:[%s1559_s6 + $0x1e0] sm:$0xff] %v699_v58  ;;  %764 = vst [vmem:[%s1559_s6 + $0x1e8] sm:$0xff] %v700_v28 }
 0x32a   : > { %765 = vst [vmem:[%s1559_s6 + $0x1f0] sm:$0xff] %v701_v60  ;;  %766 = vst [vmem:[%s1559_s6 + $0x1f8] sm:$0xff] %v702_v62 }
 0x32b   : > { %1067 = shalt.err (!%p1064_p10)
}
 0x32c   : > { %s1068_s28 = scalar_lea.hbm %s1674_s17, 8192  ;;  %s1072_s10 = scalar_lea.hbm %s1734_s3, 16384 }
 0x32d   : > { %p1069_p0 = scmp.ne.s32.totalorder %s1674_s17, %s1068_s28  ;;  %p1073_p1 = scmp.lt.s32.totalorder %s1674_s17, %s1734_s3 }
 0x32e   : > { %p1074_p3 = scmp.lt.s32.totalorder %s1072_s10, %s1068_s28 }
 0x32f   : > { %p1070_p2 = pnand %p1069_p0, %p1791_p12 }
 0x330   : > { %p1075_p6 = por %p1074_p3, %p1073_p1 }
 0x331   : > { %p1071_p9 = pneg %p1070_p2 }
 0x333   : > { %p1076_p11 = pnand %p1075_p6, %p1071_p9 }
 0x335   : > { %1079 = shalt.err (!%p1076_p11)
}
 0x336   : > { %s1127_s4 = smov 1024   ;;  %s1128_s6 = smov 64  }
 0x337   : > { %941 = dma.vmem_to_hbm [thread:$0]  (%p1791_p12), %s1676_s7, 8192, %s1674_s17, %s768_s19, %s1127_s4, %s1127_s4, %s1128_s6  }
 0x338 PF: > { %s796_s9 = sand.u32 1, %s1106_s12   ;;  %p1792_p13 = scmp.ne.s32.totalorder %s1756_s25, 0 }
 0x339   : > { %p1793_p4 = scmp.ge.s32.totalorder %s1118_s15, 2  ;;  %s797_s16 = scalar_lea.sflag [#allocation4], %s796_s9 }
 0x33b   : > { %p948_p5 = pnand %p1793_p4, %p1792_p13 }
 0x33d   : > { %p949_p7 = pneg %p948_p5 }
 0x33f   : > { %1101 = dma.done.wait (%p949_p7), %s797_s16, 8192  }
 0x340   : > { %1103 = vsyncadd (%p949_p7), %s797_s16, 4294959104  ;;  %p16_p8 = scmp.ge.s32.totalorder %s1174_s18, 4   ;;  %s1794_s12 = smov %s1110_s13 }
 0x341   : > { %s1795_s13 = smov %s1114_s14  ;;  %s1796_s14 = smov %s1186_s21 }
 0x342   : > { %s1797_s15 = smov %s1174_s18  ;;  %18 = sbr.rel (!%p16_p8) target bundleno = 5 (0x5), region = 77 }
 0x347   :  { %802 = vsyncpa [#allocation3], 1 }
 0x348   :  { %804 = vsyncpa [#allocation3 + $0x1], 1 }
 0x349   :  { %805 = vsyncpa [#allocation4], 1 }
 0x34a   :  { %807 = vsyncpa [#allocation4 + $0x1], 1 }

</bundles_post_ra>
